<compile_context>
chip_gen: v7x
topology: tpu7x:2x2x1
jax: 0.10.0
libtpu: 0.0.40
codegen_flags: <defaults>
</compile_context>

<pallas_src>
import jax
import jax.numpy as jnp
from jax.experimental import pallas as pl
from jax.experimental.pallas import tpu as pltpu


def _se_kernel(x_ref, w1_ref, w2_ref, o_ref):
    # x_ref : (TB, C, L)   w1_ref : (H, C)   w2_ref : (C, H)   o_ref : (TB, C, L)
    tb, _, l = x_ref.shape
    xf = x_ref[...].astype(jnp.float32)            # no-op for f32 inputs

    # ---- squeeze: mean over L with f32 accumulation -> (TB, C) --------------
    y = jnp.sum(xf, axis=-1) * (1.0 / l)

    w1 = w1_ref[...].astype(jnp.float32)           # (H, C)  PyTorch (out, in)
    w2 = w2_ref[...].astype(jnp.float32)           # (C, H)

    # ---- excitation: Linear(C->H) + ReLU, Linear(H->C) + Sigmoid ------------
    if tb >= 128:
        # Enough rows per block to make an MXU tile worthwhile: one batched
        # matmul per grid step, contracting the (out, in) weights directly.
        h = jax.lax.dot_general(y, w1, (((1,), (1,)), ((), ())),
                                preferred_element_type=jnp.float32)     # (TB, H)
        h = jnp.maximum(h, 0.0)
        s = jax.lax.dot_general(h, w2, (((1,), (1,)), ((), ())),
                                preferred_element_type=jnp.float32)     # (TB, C)
    else:
        # Tiny batch tile: ~64 MACs per row.  VPU broadcast-multiply + reduce
        # avoids the per-step MXU push/drain round-trip entirely.
        h = jnp.maximum(jnp.sum(y[:, None, :] * w1[None, :, :], axis=-1), 0.0)
        s = jnp.sum(h[:, None, :] * w2[None, :, :], axis=-1)
    s = jax.nn.sigmoid(s)                                               # (TB, C) f32

    # ---- scale: x * gate, multiplied in f32, single cast of the product -----
    o_ref[...] = (xf * s[:, :, None]).astype(o_ref.dtype)


def se_layer(x, w1, w2, *, target_block_bytes=1 << 20):
    """x: (B, C, L); w1: (C//r, C); w2: (C, C//r) -- PyTorch Linear weight layout."""
    B, C, L = x.shape
    H = w1.shape[0]
    assert w1.shape == (H, C) and w2.shape == (C, H)

    itemsize = x.dtype.itemsize
    slab = C * L * itemsize                  # bytes of one batch's (C, L) slab

    # Batch-fold: pick TB so each grid step streams ~target_block_bytes, but
    # keep >= 4 balanced grid steps when that still meets the target (v7x
    # megacore + per-core double-buffering).  TB must divide B (full blocks).
    want = max(1, target_block_bytes // max(slab, 1))
    if B >= 4 and (B // 4) * slab >= target_block_bytes:
        want = min(want, B // 4)
    tb = 1
    for d in range(1, B + 1):                # largest divisor of B <= want
        if B % d == 0 and d <= want:
            tb = d
    grid_b = B // tb

    # VMEM budget: double-buffered x-in + out blocks, resident weights, slack.
    w_bytes = (H * C + C * H) * w1.dtype.itemsize
    vmem_need = 4 * tb * slab + 2 * w_bytes + (2 << 20)
    vmem_limit = int(min(max(vmem_need, 32 << 20), 64 << 20))  # 64 MiB = v7x ceiling

    # Mem-bound hint for XLA scheduling around this custom call.
    cost = pl.CostEstimate(
        flops=3 * B * C * L + 4 * B * H * C,
        transcendentals=B * C,
        bytes_accessed=2 * B * C * L * itemsize + 2 * w_bytes,
    )

    return pl.pallas_call(
        _se_kernel,
        out_shape=jax.ShapeDtypeStruct((B, C, L), x.dtype),
        grid_spec=pltpu.PrefetchScalarGridSpec(
            num_scalar_prefetch=0,
            grid=(grid_b,),
            in_specs=[
                pl.BlockSpec((tb, C, L), lambda b: (b, 0, 0)),   # batch-folded slab
                pl.BlockSpec((H, C), lambda b: (0, 0)),          # resident weights
                pl.BlockSpec((C, H), lambda b: (0, 0)),
            ],
            out_specs=pl.BlockSpec((tb, C, L), lambda b: (b, 0, 0)),
        ),
        compiler_params=pltpu.CompilerParams(
            dimension_semantics=("parallel",),
            vmem_limit_bytes=vmem_limit,
        ),
        cost_estimate=cost,
    )(x, w1, w2)


if __name__ == "__main__":
    channel, reduction = 32, 16
    hidden = channel // reduction            # = 2
    B, L = 2, 8                              # L = 3 + 2 + 3 per the module's concat comment

    key = jax.random.PRNGKey(0)
    kx, k1, k2 = jax.random.split(key, 3)

    x = jax.random.normal(kx, (B, channel, L), dtype=jnp.float32)
    # deterministic synthetic weights (PyTorch nn.Linear weight shapes: (out, in))
    w1 = jax.random.normal(k1, (hidden, channel), dtype=jnp.float32) * (1.0 / channel ** 0.5)
    w2 = jax.random.normal(k2, (channel, hidden), dtype=jnp.float32) * (1.0 / hidden ** 0.5)

    out = se_layer(x, w1, w2)
    jax.block_until_ready(out)

    # pure-JAX reference of the PyTorch forward
    y_ref = jnp.mean(x, axis=-1)
    h_ref = jnp.maximum(y_ref @ w1.T, 0.0)
    s_ref = jax.nn.sigmoid(h_ref @ w2.T)
    ref = x * s_ref[:, :, None]
    assert jnp.allclose(out, ref, atol=1e-5, rtol=1e-5), float(jnp.max(jnp.abs(out - ref)))

    print("KERNEL_OK")
</pallas_src>

<mosaic_0001>
module attributes {stable_mosaic.version = 11 : i64} {
  func.func @_se_kernel(%arg0: i32, %arg1: memref<2x32x8xf32, #tpu.memory_space<vmem>>, %arg2: memref<2x32xf32, #tpu.memory_space<vmem>>, %arg3: memref<32x2xf32, #tpu.memory_space<vmem>>, %arg4: memref<2x32x8xf32, #tpu.memory_space<vmem>>) attributes {dimension_semantics = [#tpu.dimension_semantics<parallel>], iteration_bounds = array<i64: 1>, scalar_prefetch = 0 : i64, scratch_operands = 0 : i64, tpu.core_type = #tpu.core_type<tc>, window_params = [{transform_indices = @transform_0, window_bounds = array<i64: 2, 32, 8>}, {pipeline_mode = #tpu.pipeline_mode<synchronous>, transform_indices = @transform_1, window_bounds = array<i64: 2, 32>}, {pipeline_mode = #tpu.pipeline_mode<synchronous>, transform_indices = @transform_2, window_bounds = array<i64: 32, 2>}, {transform_indices = @transform_3, window_bounds = array<i64: 2, 32, 8>}]} {
    %c0 = arith.constant 0 : index
    %c0_0 = arith.constant 0 : index
    %c0_1 = arith.constant 0 : index
    %0 = vector.load %arg1[%c0, %c0_0, %c0_1] : memref<2x32x8xf32, #tpu.memory_space<vmem>>, vector<2x32x8xf32>
    %cst = arith.constant dense<0.000000e+00> : vector<2x32xf32>
    %1 = vector.multi_reduction <add>, %0, %cst [2] : vector<2x32x8xf32> to vector<2x32xf32>
    %cst_2 = arith.constant 1.250000e-01 : f32
    %2 = vector.broadcast %cst_2 : f32 to vector<2x32xf32>
    %3 = arith.mulf %1, %2 : vector<2x32xf32>
    %c0_3 = arith.constant 0 : index
    %c0_4 = arith.constant 0 : index
    %4 = vector.load %arg2[%c0_3, %c0_4] : memref<2x32xf32, #tpu.memory_space<vmem>>, vector<2x32xf32>
    %c0_5 = arith.constant 0 : index
    %c0_6 = arith.constant 0 : index
    %5 = vector.load %arg3[%c0_5, %c0_6] : memref<32x2xf32, #tpu.memory_space<vmem>>, vector<32x2xf32>
    %6 = vector.shape_cast %3 : vector<2x32xf32> to vector<2x1x32xf32>
    %7 = vector.shape_cast %4 : vector<2x32xf32> to vector<1x2x32xf32>
    %8 = vector.broadcast %6 : vector<2x1x32xf32> to vector<2x2x32xf32>
    %9 = vector.broadcast %7 : vector<1x2x32xf32> to vector<2x2x32xf32>
    %10 = arith.mulf %8, %9 : vector<2x2x32xf32>
    %cst_7 = arith.constant dense<0.000000e+00> : vector<2x2xf32>
    %11 = vector.multi_reduction <add>, %10, %cst_7 [2] : vector<2x2x32xf32> to vector<2x2xf32>
    %cst_8 = arith.constant 0.000000e+00 : f32
    %12 = vector.broadcast %cst_8 : f32 to vector<2x2xf32>
    %13 = arith.maximumf %11, %12 : vector<2x2xf32>
    %14 = vector.shape_cast %13 : vector<2x2xf32> to vector<2x1x2xf32>
    %15 = vector.shape_cast %5 : vector<32x2xf32> to vector<1x32x2xf32>
    %16 = vector.broadcast %14 : vector<2x1x2xf32> to vector<2x32x2xf32>
    %17 = vector.broadcast %15 : vector<1x32x2xf32> to vector<2x32x2xf32>
    %18 = arith.mulf %16, %17 : vector<2x32x2xf32>
    %cst_9 = arith.constant dense<0.000000e+00> : vector<2x32xf32>
    %19 = vector.multi_reduction <add>, %18, %cst_9 [2] : vector<2x32x2xf32> to vector<2x32xf32>
    %20 = arith.negf %19 : vector<2x32xf32>
    %21 = math.exp %20 : vector<2x32xf32>
    %cst_10 = arith.constant 1.000000e+00 : f32
    %22 = vector.broadcast %cst_10 : f32 to vector<2x32xf32>
    %23 = arith.addf %22, %21 : vector<2x32xf32>
    %24 = arith.divf %22, %23 : vector<2x32xf32>
    %25 = vector.shape_cast %24 : vector<2x32xf32> to vector<2x32x1xf32>
    %26 = vector.broadcast %25 : vector<2x32x1xf32> to vector<2x32x8xf32>
    %27 = arith.mulf %0, %26 : vector<2x32x8xf32>
    %c0_11 = arith.constant 0 : index
    %c0_12 = arith.constant 0 : index
    %c0_13 = arith.constant 0 : index
    %28 = vector.load %arg4[%c0_11, %c0_12, %c0_13] : memref<2x32x8xf32, #tpu.memory_space<vmem>>, vector<2x32x8xf32>
    tpu.vector_store %arg4[%c0_11, %c0_12, %c0_13], %27 {strides = array<i32>} : memref<2x32x8xf32, #tpu.memory_space<vmem>>, vector<2x32x8xf32>,
    return
  }
  func.func @transform_0(%arg0: i32) -> (i32, i32, i32) {
    %c0_i32 = arith.constant 0 : i32
    %c0_i32_0 = arith.constant 0 : i32
    %c0_i32_1 = arith.constant 0 : i32
    return %arg0, %c0_i32, %c0_i32_0 : i32, i32, i32
  }
  func.func @transform_1(%arg0: i32) -> (i32, i32) {
    %c0_i32 = arith.constant 0 : i32
    %c0_i32_0 = arith.constant 0 : i32
    %c0_i32_1 = arith.constant 0 : i32
    return %c0_i32, %c0_i32_0 : i32, i32
  }
  func.func @transform_2(%arg0: i32) -> (i32, i32) {
    %c0_i32 = arith.constant 0 : i32
    %c0_i32_0 = arith.constant 0 : i32
    %c0_i32_1 = arith.constant 0 : i32
    return %c0_i32, %c0_i32_0 : i32, i32
  }
  func.func @transform_3(%arg0: i32) -> (i32, i32, i32) {
    %c0_i32 = arith.constant 0 : i32
    %c0_i32_0 = arith.constant 0 : i32
    %c0_i32_1 = arith.constant 0 : i32
    return %arg0, %c0_i32, %c0_i32_0 : i32, i32, i32
  }
}

</mosaic_0001>

<bundles_post_ra>
// kernel: tpu_custom_call.1
= control target key start
LH: loop header
LB: loop body
LE: loop exit
PB: predicated region body
PF: predicated region fallthrough
CT: control target
= control target key end

     0   :  { %vm22_vm0 = vcmask 64512   ;;  %v61_v16 = vlaneseq  ;;  %v1335_v22 = vmov 0   ;;  %vm198_vm1 = vcmask 130112   ;;  %s1904_s0 = inlined_call_operand.vmem [shape: f32[2,32,8], index: 0, kind: input, shape index: {}]   ;;  %s1905_s1 = inlined_call_operand.vmem [shape: f32[2,32], index: 1, kind: input, shape index: {}]   ;;  %s1906_s2 = inlined_call_operand.vmem [shape: f32[32,2], index: 2, kind: input, shape index: {}]   ;;  %s1907_s3 = inlined_call_operand.vmem [shape: f32[2,32,8], index: 3, kind: output, shape index: {}]  }
   0x1   :  { %v16_v0 = vld [vmem:[%s1904_s0 + $0x10] sm:$0xff]  ;;  %v14_v1 = vld [vmem:[%s1904_s0] sm:$0xff]  ;;  %v17_v2 = vld [vmem:[%s1904_s0 + $0x18] sm:$0xff]  ;;  %1294 = vset.pattern.permute.xlu1 %v1335_v22  ;;  %1293 = vset.pattern.permute.xlu0 %v1335_v22  ;;  %vm205_vm2 = vcmask 195712   ;;  %vm212_vm3 = vcmask 261312   ;;  %vm271_vm4 = vcmask 1041409  }
   0x2   :  { %v29_v3 = vsel %vm22_vm0, %v16_v0, 0.0  ;;  %v23_v4 = vsel %vm22_vm0, %v14_v1, 0.0  ;;  %v15_v5 = vld [vmem:[%s1904_s0 + $0x8] sm:$0xff]  ;;  %v32_v6 = vsel %vm22_vm0, %v17_v2, 0.0  ;;  %v18_v9 = vld [vmem:[%s1904_s0 + $0x20] sm:$0xff]  ;;  %v21_v12 = vld [vmem:[%s1904_s0 + $0x38] sm:$0xff] }
   0x3   :  { %30 = vadd.xlane.f32.xlu1 %v29_v3  ;;  %24 = vadd.xlane.f32.xlu0 %v23_v4  ;;  %v26_v7 = vsel %vm22_vm0, %v15_v5, 0.0  ;;  %v19_v8 = vld [vmem:[%s1904_s0 + $0x28] sm:$0xff]  ;;  %v35_v11 = vsel %vm22_vm0, %v18_v9, 0.0  ;;  %v20_v13 = vld [vmem:[%s1904_s0 + $0x30] sm:$0xff]  ;;  %v44_v14 = vsel %vm22_vm0, %v21_v12, 0.0  ;;  %v1389_v17 = vshrl.u32 %v61_v16, 7 }
   0x4   :  { %v38_v10 = vsel %vm22_vm0, %v19_v8, 0.0  ;;  %v41_v15 = vsel %vm22_vm0, %v20_v13, 0.0  ;;  %v55_v19 = vld [vmem:[%s1905_s1] sm:$0x3]  ;;  %v57_v39 = vld [vmem:[%s1906_s2 + $0x8] sm:$0xff]  ;;  %v58_v48 = vld [vmem:[%s1906_s2 + $0x10] sm:$0xff] }
   0x5   :  { %v1392_v18 = vsub.s32 0, %v1389_v17  ;;  %v1399_v21 = vsub.s32 1, %v1389_v17  ;;  %v56_v24 = vld [vmem:[%s1906_s2] sm:$0xff]  ;;  %v1407_v26 = vsub.s32 3, %v1389_v17  ;;  %v305_v28 = vsub.s32 2, %v1389_v17  ;;  %v1451_v57 = vld [vmem:[%s1906_s2 + $0x18] sm:$0xff] }
   0x6   :  { %v1413_v30 = vsub.s32 5, %v1389_v17  ;;  %v1416_v32 = vsub.s32 4, %v1389_v17  ;;  %v1420_v34 = vsub.s32 7, %v1389_v17  ;;  %v1424_v36 = vsub.s32 6, %v1389_v17 }
   0x7   :  { %33 = vadd.xlane.f32.xlu1 %v32_v6  ;;  %27 = vadd.xlane.f32.xlu0 %v26_v7  ;;  %v64_v20 = vrot.slane %v55_v19, %v1392_v18  ;;  %v83_v23 = vrot.slane %v55_v19, %v1399_v21  ;;  %v292_v25 = vrot.slane %v56_v24, %v1392_v18  ;;  %vm276_vm5 = vcmask 254976  }
   0x8   :  { %v299_v27 = vrot.slane %v56_v24, %v1399_v21  ;;  %v313_v29 = vrot.slane %v56_v24, %v1407_v26  ;;  %v306_v31 = vrot.slane %v56_v24, %v305_v28  ;;  %v327_v33 = vrot.slane %v56_v24, %v1413_v30 }
   0x9   :  { %v320_v35 = vrot.slane %v56_v24, %v1416_v32  ;;  %v341_v37 = vrot.slane %v56_v24, %v1420_v34  ;;  %v334_v38 = vrot.slane %v56_v24, %v1424_v36  ;;  %v355_v40 = vrot.slane %v57_v39, %v1399_v21 }
   0xa   :  { %v348_v41 = vrot.slane %v57_v39, %v1392_v18  ;;  %v369_v42 = vrot.slane %v57_v39, %v1407_v26  ;;  %v362_v43 = vrot.slane %v57_v39, %v305_v28  ;;  %v383_v44 = vrot.slane %v57_v39, %v1413_v30 }
   0xb   :  { %39 = vadd.xlane.f32.xlu1 %v38_v10  ;;  %36 = vadd.xlane.f32.xlu0 %v35_v11  ;;  %v376_v45 = vrot.slane %v57_v39, %v1416_v32  ;;  %v397_v46 = vrot.slane %v57_v39, %v1420_v34  ;;  %v390_v47 = vrot.slane %v57_v39, %v1424_v36  ;;  %vm1122_vm6 = vcmask 1042434  }
   0xc   :  { %v411_v49 = vrot.slane %v58_v48, %v1399_v21  ;;  %v404_v50 = vrot.slane %v58_v48, %v1392_v18  ;;  %v425_v51 = vrot.slane %v58_v48, %v1407_v26  ;;  %v418_v52 = vrot.slane %v58_v48, %v305_v28 }
   0xd   :  { %v439_v53 = vrot.slane %v58_v48, %v1413_v30  ;;  %v432_v54 = vrot.slane %v58_v48, %v1416_v32  ;;  %v453_v55 = vrot.slane %v58_v48, %v1420_v34  ;;  %v446_v56 = vrot.slane %v58_v48, %v1424_v36 }
   0xe   :  { %v467_v58 = vrot.slane %v1451_v57, %v1399_v21  ;;  %v460_v59 = vrot.slane %v1451_v57, %v1392_v18  ;;  %v474_v60 = vrot.slane %v1451_v57, %v305_v28  ;;  %v509_v48 = vrot.slane %v1451_v57, %v1420_v34 }
   0xf   :  { %45 = vadd.xlane.f32.xlu1 %v44_v14  ;;  %42 = vadd.xlane.f32.xlu0 %v41_v15  ;;  %vm1124_vm7 = vcmask 1043459   ;;  %vm1126_vm8 = vcmask 1044484   ;;  %vm1128_vm9 = vcmask 1045509   ;;  %vm1130_vm10 = vcmask 1046534  }
  0x10   :  { %vm1132_vm11 = vcmask 1047559   ;;  %vm1191_vm12 = vcmask 15360  }
  0x20   :  { %70 = vbcast.lane.b32.xlu1 %v64_v20, 264 }
  0x24   :  { %74 = vbcast.lane.b32.xlu1 %v64_v20, 272 }
  0x25   :  { %66 = vbcast.lane.b32.xlu0 %v64_v20, 256 }
  0x28   :  { %78 = vbcast.lane.b32.xlu1 %v64_v20, 280 }
  0x29   :  { %85 = vbcast.lane.b32.xlu0 %v83_v23, 256 }
  0x2c   :  { %89 = vbcast.lane.b32.xlu1 %v83_v23, 264 }
  0x2d   :  { %93 = vbcast.lane.b32.xlu0 %v83_v23, 272 }
  0x30   :  { %97 = vbcast.lane.b32.xlu1 %v83_v23, 280 }
  0x31   :  { %294 = vbcast.lane.b32.xlu0 %v292_v25, 256 }
  0x34   :  { %301 = vbcast.lane.b32.xlu1 %v299_v27, 256 }
  0x35   :  { %315 = vbcast.lane.b32.xlu0 %v313_v29, 256 }
  0x38   :  { %308 = vbcast.lane.b32.xlu1 %v306_v31, 256 }
  0x39   :  { %329 = vbcast.lane.b32.xlu0 %v327_v33, 256 }
  0x3c   :  { %322 = vbcast.lane.b32.xlu1 %v320_v35, 256 }
  0x3d   :  { %343 = vbcast.lane.b32.xlu0 %v341_v37, 256 }
  0x40   :  { %336 = vbcast.lane.b32.xlu1 %v334_v38, 256 }
  0x41   :  { %357 = vbcast.lane.b32.xlu0 %v355_v40, 256 }
  0x44   :  { %350 = vbcast.lane.b32.xlu1 %v348_v41, 256 }
  0x45   :  { %371 = vbcast.lane.b32.xlu0 %v369_v42, 256 }
  0x48   :  { %364 = vbcast.lane.b32.xlu1 %v362_v43, 256  ;;  %v488_v43 = vrot.slane %v1451_v57, %v1416_v32 }
  0x49   :  { %385 = vbcast.lane.b32.xlu0 %v383_v44, 256 }
  0x4c   :  { %378 = vbcast.lane.b32.xlu1 %v376_v45, 256  ;;  %v502_v45 = vrot.slane %v1451_v57, %v1424_v36 }
  0x4d   :  { %399 = vbcast.lane.b32.xlu0 %v397_v46, 256  ;;  %v481_v46 = vrot.slane %v1451_v57, %v1407_v26 }
  0x50   :  { %392 = vbcast.lane.b32.xlu1 %v390_v47, 256  ;;  %v495_v47 = vrot.slane %v1451_v57, %v1413_v30 }
  0x51   :  { %413 = vbcast.lane.b32.xlu0 %v411_v49, 256 }
  0x54   :  { %406 = vbcast.lane.b32.xlu1 %v404_v50, 256 }
  0x55   :  { %427 = vbcast.lane.b32.xlu0 %v425_v51, 256 }
  0x58   :  { %420 = vbcast.lane.b32.xlu1 %v418_v52, 256 }
  0x59   :  { %441 = vbcast.lane.b32.xlu0 %v439_v53, 256 }
  0x5c   :  { %434 = vbcast.lane.b32.xlu1 %v432_v54, 256 }
  0x5d   :  { %455 = vbcast.lane.b32.xlu0 %v453_v55, 256 }
  0x60   :  { %448 = vbcast.lane.b32.xlu1 %v446_v56, 256 }
  0x61   :  { %469 = vbcast.lane.b32.xlu0 %v467_v58, 256 }
  0x64   :  { %462 = vbcast.lane.b32.xlu1 %v460_v59, 256 }
  0x68   :  { %476 = vbcast.lane.b32.xlu1 %v474_v60, 256 }
  0x90   :  { %v31_v61 = vpop.xlane.xlu1 %30  ;;  %v25_v62 = vpop.xlane.xlu0 %24 }
  0x91   :  { %v47_v5 = vmul.f32 0.125, %v25_v62  ;;  %v49_v11 = vmul.f32 0.125, %v31_v61 }
  0x94   :  { %v34_v63 = vpop.xlane.xlu1 %33  ;;  %v28_v0 = vpop.xlane.xlu0 %27 }
  0x95   :  { %v48_v6 = vmul.f32 0.125, %v28_v0  ;;  %v50_v15 = vmul.f32 0.125, %v34_v63 }
  0x98   :  { %v40_v1 = vpop.xlane.xlu1 %39  ;;  %v37_v2 = vpop.xlane.xlu0 %36 }
  0x99   :  { %v51_v25 = vmul.f32 0.125, %v37_v2  ;;  %v52_v31 = vmul.f32 0.125, %v40_v1 }
  0x9c   :  { %v46_v3 = vpop.xlane.xlu1 %45  ;;  %v43_v4 = vpop.xlane.xlu0 %42 }
  0x9d   :  { %v53_v33 = vmul.f32 0.125, %v43_v4  ;;  %v54_v38 = vmul.f32 0.125, %v46_v3 }
  0xa0   :  { %v71_v7 = vpop.permute.xlu1 %70  ;;  %v67_v8 = vpop.permute.xlu0 %66 }
  0xa1   :  { %v108_v9 = vmul.f32 %v71_v7, %v48_v6  ;;  %v107_v10 = vmul.f32 %v67_v8, %v47_v5  ;;  %v115_v28 = vmul.f32 %v67_v8, %v51_v25  ;;  %v116_v35 = vmul.f32 %v71_v7, %v52_v31 }
  0xa2   :  { %v188_v8 = vand.u32 127, %v61_v16 }
  0xa3   :  { %143 = vperm.xlu1 %1294, %v108_v9   ;;  %140 = vperm.xlu0 %1293, %v107_v10  }
  0xa4   :  { %v75_v12 = vpop.permute.xlu1 %74  ;;  %v86_v13 = vpop.permute.xlu0 %85 }
  0xa5   :  { %v109_v14 = vmul.f32 %v75_v12, %v49_v11  ;;  %v111_v19 = vmul.f32 %v86_v13, %v47_v5  ;;  %v117_v37 = vmul.f32 %v75_v12, %v53_v33  ;;  %v119_v39 = vmul.f32 %v86_v13, %v51_v25 }
  0xa6   :  { %v200_v12 = vadd.s32 4294967280, %v188_v8  ;;  %v207_v13 = vadd.s32 4294967272, %v188_v8 }
  0xa7   :  { %146 = vperm.xlu1 %1294, %v109_v14  }
  0xa8   :  { %v79_v18 = vpop.permute.xlu1 %78  ;;  %v94_v21 = vpop.permute.xlu0 %93 }
  0xa9   :  { %v110_v20 = vmul.f32 %v79_v18, %v50_v15  ;;  %v113_v23 = vmul.f32 %v94_v21, %v49_v11  ;;  %v118_v40 = vmul.f32 %v79_v18, %v54_v38  ;;  %v121_v41 = vmul.f32 %v94_v21, %v53_v33 }
  0xaa   :  { %v193_v11 = vadd.s32 4294967288, %v188_v8  ;;  %v1524_v18 = vsub.s32 %v188_v8, %v1389_v17  ;;  %v210_v21 = vsub.s32 %v207_v13, %v1389_v17 }
  0xab   :  { %149 = vperm.xlu0 %1293, %v110_v20   ;;  %152 = vperm.xlu1 %1294, %v111_v19   ;;  %v203_v20 = vsub.s32 %v200_v12, %v1389_v17 }
  0xac   :  { %v90_v22 = vpop.permute.xlu1 %89  ;;  %v1472_v50 = vpop.permute.xlu0 %294  ;;  %v196_v19 = vsub.s32 %v193_v11, %v1389_v17 }
  0xad   :  { %v112_v24 = vmul.f32 %v90_v22, %v48_v6  ;;  %v120_v42 = vmul.f32 %v90_v22, %v52_v31 }
  0xaf   :  { %155 = vperm.xlu0 %1293, %v112_v24   ;;  %158 = vperm.xlu1 %1294, %v113_v23  }
  0xb0   :  { %v98_v27 = vpop.permute.xlu1 %97  ;;  %v1476_v51 = vpop.permute.xlu0 %315 }
  0xb1   :  { %v114_v29 = vmul.f32 %v98_v27, %v50_v15  ;;  %v122_v44 = vmul.f32 %v98_v27, %v54_v38 }
  0xb3   :  { %161 = vperm.xlu0 %1293, %v114_v29   ;;  %164 = vperm.xlu1 %1294, %v115_v28  }
  0xb4   :  { %v1468_v32 = vpop.permute.xlu1 %301  ;;  %v1480_v52 = vpop.permute.xlu0 %329 }
  0xb7   :  { %167 = vperm.xlu0 %1293, %v116_v35   ;;  %170 = vperm.xlu1 %1294, %v117_v37  }
  0xb8   :  { %v1470_v49 = vpop.permute.xlu1 %308  ;;  %v1484_v53 = vpop.permute.xlu0 %343 }
  0xbb   :  { %173 = vperm.xlu0 %1293, %v118_v40   ;;  %176 = vperm.xlu1 %1294, %v119_v39  }
  0xbc   :  { %v1474_v36 = vpop.permute.xlu1 %322  ;;  %v1488_v54 = vpop.permute.xlu0 %357 }
  0xbf   :  { %179 = vperm.xlu0 %1293, %v120_v42   ;;  %182 = vperm.xlu1 %1294, %v121_v41  }
  0xc0   :  { %v1478_v26 = vpop.permute.xlu1 %336  ;;  %v1492_v56 = vpop.permute.xlu0 %371 }
  0xc3   :  { %185 = vperm.xlu0 %1293, %v122_v44   ;;  %490 = vbcast.lane.b32.xlu1 %v488_v43, 256 }
  0xc4   :  { %v1482_v30 = vpop.permute.xlu1 %350  ;;  %v1496_v58 = vpop.permute.xlu0 %385 }
  0xc7   :  { %504 = vbcast.lane.b32.xlu1 %v502_v45, 256  ;;  %483 = vbcast.lane.b32.xlu0 %v481_v46, 256 }
  0xc8   :  { %v1486_v34 = vpop.permute.xlu1 %364  ;;  %v1500_v60 = vpop.permute.xlu0 %399 }
  0xcb   :  { %497 = vbcast.lane.b32.xlu0 %v495_v47, 256 }
  0xcc   :  { %v1490_v55 = vpop.permute.xlu1 %378  ;;  %v1504_v62 = vpop.permute.xlu0 %413 }
  0xcf   :  { %511 = vbcast.lane.b32.xlu0 %v509_v48, 256 }
  0xd0   :  { %v1494_v57 = vpop.permute.xlu1 %392  ;;  %v1508_v0 = vpop.permute.xlu0 %427 }
  0xd4   :  { %v1498_v59 = vpop.permute.xlu1 %406  ;;  %v1512_v2 = vpop.permute.xlu0 %441 }
  0xd8   :  { %v1502_v61 = vpop.permute.xlu1 %420  ;;  %v1516_v4 = vpop.permute.xlu0 %455 }
  0xdc   :  { %v1506_v63 = vpop.permute.xlu1 %434  ;;  %v1520_v6 = vpop.permute.xlu0 %469 }
  0xe0   :  { %v1510_v1 = vpop.permute.xlu1 %448 }
  0xe4   :  { %v1514_v3 = vpop.permute.xlu1 %462 }
  0xe8   :  { %v1518_v5 = vpop.permute.xlu1 %476 }
 0x122   :  { %v144_v7 = vpop.permute.xlu1 %143  ;;  %v141_v9 = vpop.permute.xlu0 %140 }
 0x123   :  { %v197_v24 = vrot.slane %v144_v7, %v196_v19  ;;  %v192_v16 = vrot.slane %v141_v9, %v1524_v18 }
 0x125   :  { %v199_v17 = vsel %vm198_vm1, %v197_v24, %v192_v16 }
 0x126   :  { %v147_v10 = vpop.permute.xlu1 %146 }
 0x127   :  { %v204_v28 = vrot.slane %v147_v10, %v203_v20 }
 0x129   :  { %v206_v39 = vsel %vm205_vm2, %v204_v28, %v199_v17 }
 0x12a   :  { %v153_v14 = vpop.permute.xlu1 %152  ;;  %v150_v15 = vpop.permute.xlu0 %149 }
 0x12b   :  { %v217_v25 = vrot.slane %v153_v14, %v1524_v18  ;;  %v211_v31 = vrot.slane %v150_v15, %v210_v21 }
 0x12d   :  { %v213_v41 = vsel %vm212_vm3, %v211_v31, %v206_v39 }
 0x12e   :  { %v159_v22 = vpop.permute.xlu1 %158  ;;  %v156_v23 = vpop.permute.xlu0 %155 }
 0x12f   :  { %v221_v27 = vrot.slane %v156_v23, %v196_v19  ;;  %v226_v29 = vrot.slane %v159_v22, %v203_v20 }
 0x131   :  { %v222_v33 = vsel %vm198_vm1, %v221_v27, %v217_v25 }
 0x132   :  { %v165_v35 = vpop.permute.xlu1 %164  ;;  %v162_v37 = vpop.permute.xlu0 %161  ;;  %v227_v40 = vsel %vm205_vm2, %v226_v29, %v222_v33 }
 0x133   :  { %v231_v38 = vrot.slane %v162_v37, %v210_v21  ;;  %v236_v10 = vrot.slane %v165_v35, %v1524_v18 }
 0x135   :  { %v232_v42 = vsel %vm212_vm3, %v231_v38, %v227_v40 }
 0x136   :  { %v171_v43 = vpop.permute.xlu1 %170  ;;  %v168_v44 = vpop.permute.xlu0 %167  ;;  %v272_v45 = vsel %vm271_vm4, %v232_v42, %v213_v41 }
 0x137   :  { %v277_v46 = vsel %vm276_vm5, %v272_v45, 0.0  ;;  %v240_v7 = vrot.slane %v168_v44, %v196_v19  ;;  %v245_v13 = vrot.slane %v171_v43, %v203_v20 }
 0x138   :  { %278 = vadd.xlane.f32.xlu1 %v277_v46 }
 0x139   :  { %v241_v15 = vsel %vm198_vm1, %v240_v7, %v236_v10 }
 0x13a   :  { %v177_v47 = vpop.permute.xlu1 %176  ;;  %v174_v48 = vpop.permute.xlu0 %173  ;;  %v246_v25 = vsel %vm205_vm2, %v245_v13, %v241_v15 }
 0x13b   :  { %v255_v11 = vrot.slane %v177_v47, %v1524_v18  ;;  %v250_v22 = vrot.slane %v174_v48, %v210_v21 }
 0x13d   :  { %v251_v28 = vsel %vm212_vm3, %v250_v22, %v246_v25 }
 0x13e   :  { %v183_v8 = vpop.permute.xlu1 %182  ;;  %v180_v9 = vpop.permute.xlu0 %179 }
 0x13f   :  { %v259_v12 = vrot.slane %v180_v9, %v196_v19  ;;  %v264_v14 = vrot.slane %v183_v8, %v203_v20 }
 0x141   :  { %v260_v23 = vsel %vm198_vm1, %v259_v12, %v255_v11 }
 0x142   :  { %v186_v24 = vpop.permute.xlu0 %185  ;;  %v265_v27 = vsel %vm205_vm2, %v264_v14, %v260_v23  ;;  %v1549_v20 = vpop.permute.xlu1 %490 }
 0x143   :  { %v269_v16 = vrot.slane %v186_v24, %v210_v21 }
 0x145   :  { %v270_v29 = vsel %vm212_vm3, %v269_v16, %v265_v27 }
 0x146   :  { %v273_v31 = vsel %vm271_vm4, %v270_v29, %v251_v28  ;;  %v1551_v33 = vpop.permute.xlu1 %504  ;;  %v1553_v35 = vpop.permute.xlu0 %483 }
 0x147   :  { %v280_v19 = vsel %vm276_vm5, %v273_v31, 0.0 }
 0x148   :  { %281 = vadd.xlane.f32.xlu0 %v280_v19 }
 0x14a   :  { %v1557_v17 = vpop.permute.xlu0 %497 }
 0x14e   :  { %v512_v42 = vpop.permute.xlu0 %511 }
 0x1c5   :  { %v279_v21 = vpop.xlane.xlu1 %278 }
 0x1c6   :  { %v1555_v37 = vmax.f32 %v279_v21, 0.0 }
 0x1c8   :  { %v545_v38 = vmul.f32 %v1472_v50, %v1555_v37  ;;  %v546_v39 = vmul.f32 %v1468_v32, %v1555_v37  ;;  %v547_v40 = vmul.f32 %v1470_v49, %v1555_v37  ;;  %v548_v41 = vmul.f32 %v1476_v51, %v1555_v37 }
 0x1c9   :  { %v1569_v43 = vmul.f32 %v1551_v33, %v1555_v37  ;;  %v1572_v44 = vmul.f32 %v512_v42, %v1555_v37  ;;  %v549_v45 = vmul.f32 %v1474_v36, %v1555_v37  ;;  %v550_v46 = vmul.f32 %v1480_v52, %v1555_v37 }
 0x1ca   :  { %674 = vperm.xlu1 %1294, %v545_v38   ;;  %677 = vperm.xlu0 %1293, %v546_v39   ;;  %v551_v47 = vmul.f32 %v1478_v26, %v1555_v37  ;;  %v552_v48 = vmul.f32 %v1484_v53, %v1555_v37  ;;  %v553_v7 = vmul.f32 %v1482_v30, %v1555_v37 }
 0x1cb   :  { %v554_v9 = vmul.f32 %v1488_v54, %v1555_v37  ;;  %v555_v11 = vmul.f32 %v1486_v34, %v1555_v37  ;;  %v556_v12 = vmul.f32 %v1492_v56, %v1555_v37  ;;  %v557_v14 = vmul.f32 %v1490_v55, %v1555_v37 }
 0x1cc   :  { %v558_v15 = vmul.f32 %v1496_v58, %v1555_v37  ;;  %v559_v22 = vmul.f32 %v1494_v57, %v1555_v37  ;;  %v560_v23 = vmul.f32 %v1500_v60, %v1555_v37  ;;  %v561_v24 = vmul.f32 %v1498_v59, %v1555_v37 }
 0x1cd   :  { %v562_v16 = vmul.f32 %v1504_v62, %v1555_v37  ;;  %v563_v25 = vmul.f32 %v1502_v61, %v1555_v37  ;;  %v564_v27 = vmul.f32 %v1508_v0, %v1555_v37  ;;  %v565_v28 = vmul.f32 %v1506_v63, %v1555_v37 }
 0x1ce   :  { %680 = vperm.xlu1 %1294, %v547_v40   ;;  %683 = vperm.xlu0 %1293, %v548_v41   ;;  %v566_v29 = vmul.f32 %v1512_v2, %v1555_v37  ;;  %v567_v31 = vmul.f32 %v1510_v1, %v1555_v37  ;;  %v568_v19 = vmul.f32 %v1516_v4, %v1555_v37 }
 0x1cf   :  { %v569_v21 = vmul.f32 %v1514_v3, %v1555_v37  ;;  %v570_v38 = vmul.f32 %v1520_v6, %v1555_v37  ;;  %v571_v39 = vmul.f32 %v1518_v5, %v1555_v37  ;;  %v572_v40 = vmul.f32 %v1553_v35, %v1555_v37 }
 0x1d2   :  { %686 = vperm.xlu1 %1294, %v549_v45   ;;  %689 = vperm.xlu0 %1293, %v550_v46  }
 0x1d5   :  { %v282_v8 = vpop.xlane.xlu0 %281 }
 0x1d6   :  { %692 = vperm.xlu1 %1294, %v551_v47   ;;  %695 = vperm.xlu0 %1293, %v552_v48   ;;  %v1586_v10 = vmax.f32 %v282_v8, 0.0 }
 0x1d8   :  { %v1593_v13 = vmul.f32 %v512_v42, %v1586_v10  ;;  %v577_v41 = vmul.f32 %v1472_v50, %v1586_v10  ;;  %v578_v42 = vmul.f32 %v1468_v32, %v1586_v10  ;;  %v585_v45 = vmul.f32 %v1482_v30, %v1586_v10 }
 0x1d9   :  { %v586_v46 = vmul.f32 %v1488_v54, %v1586_v10  ;;  %v593_v47 = vmul.f32 %v1498_v59, %v1586_v10  ;;  %v594_v48 = vmul.f32 %v1504_v62, %v1586_v10  ;;  %v601_v32 = vmul.f32 %v1514_v3, %v1586_v10 }
 0x1da   :  { %698 = vperm.xlu1 %1294, %v553_v7   ;;  %701 = vperm.xlu0 %1293, %v554_v9   ;;  %v602_v50 = vmul.f32 %v1520_v6, %v1586_v10  ;;  %v579_v30 = vmul.f32 %v1470_v49, %v1586_v10  ;;  %v587_v54 = vmul.f32 %v1486_v34, %v1586_v10 }
 0x1db   :  { %v595_v59 = vmul.f32 %v1502_v61, %v1586_v10  ;;  %v603_v62 = vmul.f32 %v1518_v5, %v1586_v10  ;;  %v580_v3 = vmul.f32 %v1476_v51, %v1586_v10  ;;  %v588_v6 = vmul.f32 %v1492_v56, %v1586_v10 }
 0x1dc   :  { %v596_v49 = vmul.f32 %v1508_v0, %v1586_v10  ;;  %v604_v34 = vmul.f32 %v1553_v35, %v1586_v10  ;;  %v573_v61 = vmul.f32 %v1549_v20, %v1555_v37  ;;  %v581_v5 = vmul.f32 %v1474_v36, %v1586_v10 }
 0x1dd   :  { %v589_v51 = vmul.f32 %v1490_v55, %v1586_v10  ;;  %v597_v56 = vmul.f32 %v1506_v63, %v1586_v10  ;;  %v605_v0 = vmul.f32 %v1549_v20, %v1586_v10  ;;  %v574_v35 = vmul.f32 %v1557_v17, %v1555_v37 }
 0x1de   :  { %704 = vperm.xlu1 %1294, %v555_v11   ;;  %707 = vperm.xlu0 %1293, %v556_v12   ;;  %v582_v36 = vmul.f32 %v1480_v52, %v1586_v10  ;;  %v590_v7 = vmul.f32 %v1496_v58, %v1586_v10  ;;  %v598_v55 = vmul.f32 %v1512_v2, %v1586_v10 }
 0x1df   :  { %v606_v63 = vmul.f32 %v1557_v17, %v1586_v10  ;;  %v583_v20 = vmul.f32 %v1478_v26, %v1586_v10  ;;  %v591_v52 = vmul.f32 %v1494_v57, %v1586_v10  ;;  %v599_v58 = vmul.f32 %v1510_v1, %v1586_v10 }
 0x1e0   :  { %v607_v2 = vmul.f32 %v1551_v33, %v1586_v10  ;;  %v584_v26 = vmul.f32 %v1484_v53, %v1586_v10  ;;  %v592_v37 = vmul.f32 %v1500_v60, %v1586_v10  ;;  %v600_v57 = vmul.f32 %v1516_v4, %v1586_v10 }
 0x1e2   :  { %710 = vperm.xlu1 %1294, %v557_v14   ;;  %713 = vperm.xlu0 %1293, %v558_v15  }
 0x1e6   :  { %716 = vperm.xlu1 %1294, %v559_v22   ;;  %719 = vperm.xlu0 %1293, %v560_v23  }
 0x1ea   :  { %722 = vperm.xlu1 %1294, %v561_v24   ;;  %725 = vperm.xlu0 %1293, %v562_v16  }
 0x1ee   :  { %728 = vperm.xlu1 %1294, %v563_v25   ;;  %731 = vperm.xlu0 %1293, %v564_v27  }
 0x1f2   :  { %734 = vperm.xlu1 %1294, %v565_v28   ;;  %737 = vperm.xlu0 %1293, %v566_v29  }
 0x1f6   :  { %740 = vperm.xlu1 %1294, %v567_v31   ;;  %743 = vperm.xlu0 %1293, %v568_v19  }
 0x1fa   :  { %746 = vperm.xlu1 %1294, %v569_v21   ;;  %749 = vperm.xlu0 %1293, %v570_v38  }
 0x1fe   :  { %752 = vperm.xlu1 %1294, %v571_v39   ;;  %755 = vperm.xlu0 %1293, %v572_v40  }
 0x202   :  { %770 = vperm.xlu1 %1294, %v577_v41   ;;  %773 = vperm.xlu0 %1293, %v578_v42  }
 0x206   :  { %794 = vperm.xlu1 %1294, %v585_v45   ;;  %797 = vperm.xlu0 %1293, %v586_v46  }
 0x20a   :  { %818 = vperm.xlu1 %1294, %v593_v47   ;;  %821 = vperm.xlu0 %1293, %v594_v48  }
 0x20e   :  { %842 = vperm.xlu1 %1294, %v601_v32   ;;  %845 = vperm.xlu0 %1293, %v602_v50  }
 0x212   :  { %776 = vperm.xlu1 %1294, %v579_v30   ;;  %800 = vperm.xlu0 %1293, %v587_v54  }
 0x216   :  { %824 = vperm.xlu1 %1294, %v595_v59   ;;  %848 = vperm.xlu0 %1293, %v603_v62  }
 0x21a   :  { %779 = vperm.xlu1 %1294, %v580_v3   ;;  %803 = vperm.xlu0 %1293, %v588_v6  }
 0x21e   :  { %827 = vperm.xlu1 %1294, %v596_v49   ;;  %851 = vperm.xlu0 %1293, %v604_v34  }
 0x222   :  { %758 = vperm.xlu1 %1294, %v573_v61   ;;  %782 = vperm.xlu0 %1293, %v581_v5  }
 0x226   :  { %806 = vperm.xlu1 %1294, %v589_v51   ;;  %830 = vperm.xlu0 %1293, %v597_v56  }
 0x22a   :  { %854 = vperm.xlu1 %1294, %v605_v0   ;;  %761 = vperm.xlu0 %1293, %v574_v35  }
 0x22e   :  { %785 = vperm.xlu1 %1294, %v582_v36   ;;  %809 = vperm.xlu0 %1293, %v590_v7  }
 0x232   :  { %833 = vperm.xlu1 %1294, %v598_v55   ;;  %857 = vperm.xlu0 %1293, %v606_v63  }
 0x236   :  { %764 = vperm.xlu1 %1294, %v1569_v43   ;;  %788 = vperm.xlu0 %1293, %v583_v20  }
 0x23a   :  { %812 = vperm.xlu1 %1294, %v591_v52   ;;  %836 = vperm.xlu0 %1293, %v599_v58  }
 0x23e   :  { %860 = vperm.xlu1 %1294, %v607_v2   ;;  %767 = vperm.xlu0 %1293, %v1572_v44  }
 0x242   :  { %791 = vperm.xlu1 %1294, %v584_v26   ;;  %815 = vperm.xlu0 %1293, %v592_v37  }
 0x246   :  { %839 = vperm.xlu1 %1294, %v600_v57   ;;  %863 = vperm.xlu0 %1293, %v1593_v13  }
 0x249   :  { %v675_v1 = vpop.permute.xlu1 %674  ;;  %v678_v17 = vpop.permute.xlu0 %677 }
 0x24a   :  { %v868_v53 = vrot.slane %v675_v1, %v1524_v18  ;;  %v872_v11 = vrot.slane %v678_v17, %v1524_v18 }
 0x24c   :  { %v1121_v4 = vsel %vm271_vm4, %v872_v11, %v868_v53 }
 0x24d   :  { %v681_v33 = vpop.permute.xlu1 %680  ;;  %v684_v43 = vpop.permute.xlu0 %683 }
 0x24e   :  { %v876_v12 = vrot.slane %v681_v33, %v1524_v18  ;;  %v880_v10 = vrot.slane %v684_v43, %v1524_v18 }
 0x250   :  { %v1123_v15 = vsel %vm1122_vm6, %v876_v12, %v1121_v4 }
 0x251   :  { %v687_v8 = vpop.permute.xlu1 %686  ;;  %v690_v44 = vpop.permute.xlu0 %689  ;;  %v1125_v25 = vsel %vm1124_vm7, %v880_v10, %v1123_v15 }
 0x252   :  { %v884_v22 = vrot.slane %v687_v8, %v1524_v18  ;;  %v888_v27 = vrot.slane %v690_v44, %v1524_v18 }
 0x254   :  { %v1127_v31 = vsel %vm1126_vm8, %v884_v22, %v1125_v25 }
 0x255   :  { %v693_v9 = vpop.permute.xlu1 %692  ;;  %v696_v60 = vpop.permute.xlu0 %695  ;;  %v1129_v41 = vsel %vm1128_vm9, %v888_v27, %v1127_v31 }
 0x256   :  { %v892_v19 = vrot.slane %v693_v9, %v1524_v18  ;;  %v896_v42 = vrot.slane %v696_v60, %v1524_v18 }
 0x258   :  { %v1131_v32 = vsel %vm1130_vm10, %v892_v19, %v1129_v41 }
 0x259   :  { %v699_v14 = vpop.permute.xlu1 %698  ;;  %v702_v13 = vpop.permute.xlu0 %701  ;;  %v1133_v62 = vsel %vm1132_vm11, %v896_v42, %v1131_v32 }
 0x25a   :  { %v900_v23 = vrot.slane %v699_v14, %v1524_v18  ;;  %v904_v24 = vrot.slane %v702_v13, %v1524_v18  ;;  %v1192_v61 = vsel %vm1191_vm12, %v1133_v62, 0.0 }
 0x25c   :  { %v1134_v21 = vsel %vm271_vm4, %v904_v24, %v900_v23 }
 0x25d   :  { %v705_v16 = vpop.permute.xlu1 %704  ;;  %v708_v29 = vpop.permute.xlu0 %707 }
 0x25e   :  { %v908_v28 = vrot.slane %v705_v16, %v1524_v18  ;;  %v912_v38 = vrot.slane %v708_v29, %v1524_v18 }
 0x260   :  { %v1135_v39 = vsel %vm1122_vm6, %v908_v28, %v1134_v21 }
 0x261   :  { %v711_v40 = vpop.permute.xlu1 %710  ;;  %v714_v46 = vpop.permute.xlu0 %713  ;;  %v1136_v47 = vsel %vm1124_vm7, %v912_v38, %v1135_v39 }
 0x262   :  { %v916_v45 = vrot.slane %v711_v40, %v1524_v18  ;;  %v920_v48 = vrot.slane %v714_v46, %v1524_v18 }
 0x264   :  { %v1137_v50 = vsel %vm1126_vm8, %v916_v45, %v1136_v47 }
 0x265   :  { %v717_v30 = vpop.permute.xlu1 %716  ;;  %v720_v59 = vpop.permute.xlu0 %719  ;;  %v1138_v3 = vsel %vm1128_vm9, %v920_v48, %v1137_v50 }
 0x266   :  { %v924_v54 = vrot.slane %v717_v30, %v1524_v18  ;;  %v928_v6 = vrot.slane %v720_v59, %v1524_v18 }
 0x268   :  { %v1139_v49 = vsel %vm1130_vm10, %v924_v54, %v1138_v3 }
 0x269   :  { %v723_v34 = vpop.permute.xlu1 %722  ;;  %v1140_v5 = vsel %vm1132_vm11, %v928_v6, %v1139_v49  ;;  %v726_v51 = vpop.permute.xlu0 %725 }
 0x26a   :  { %1193 = vadd.xlane.f32.xlu1 %v1192_v61  ;;  %v1195_v56 = vsel %vm1191_vm12, %v1140_v5, 0.0  ;;  %v932_v0 = vrot.slane %v723_v34, %v1524_v18  ;;  %v936_v35 = vrot.slane %v726_v51, %v1524_v18 }
 0x26b   :  { %1196 = vadd.xlane.f32.xlu0 %v1195_v56 }
 0x26c   :  { %v1141_v63 = vsel %vm271_vm4, %v936_v35, %v932_v0 }
 0x26d   :  { %v729_v36 = vpop.permute.xlu1 %728  ;;  %v732_v55 = vpop.permute.xlu0 %731 }
 0x26e   :  { %v940_v7 = vrot.slane %v729_v36, %v1524_v18  ;;  %v944_v20 = vrot.slane %v732_v55, %v1524_v18 }
 0x270   :  { %v1142_v52 = vsel %vm1122_vm6, %v940_v7, %v1141_v63 }
 0x271   :  { %v735_v58 = vpop.permute.xlu1 %734  ;;  %v738_v26 = vpop.permute.xlu0 %737  ;;  %v1143_v37 = vsel %vm1124_vm7, %v944_v20, %v1142_v52 }
 0x272   :  { %v948_v2 = vrot.slane %v735_v58, %v1524_v18  ;;  %v952_v57 = vrot.slane %v738_v26, %v1524_v18 }
 0x274   :  { %v1144_v1 = vsel %vm1126_vm8, %v948_v2, %v1143_v37 }
 0x275   :  { %v741_v17 = vpop.permute.xlu1 %740  ;;  %v744_v43 = vpop.permute.xlu0 %743  ;;  %v1145_v8 = vsel %vm1128_vm9, %v952_v57, %v1144_v1 }
 0x276   :  { %v956_v33 = vrot.slane %v741_v17, %v1524_v18  ;;  %v960_v44 = vrot.slane %v744_v43, %v1524_v18 }
 0x278   :  { %v1146_v9 = vsel %vm1130_vm10, %v956_v33, %v1145_v8 }
 0x279   :  { %v747_v53 = vpop.permute.xlu1 %746  ;;  %v1147_v11 = vsel %vm1132_vm11, %v960_v44, %v1146_v9  ;;  %v750_v60 = vpop.permute.xlu0 %749 }
 0x27a   :  { %v1198_v12 = vsel %vm1191_vm12, %v1147_v11, 0.0  ;;  %v964_v50 = vrot.slane %v747_v53, %v1524_v18  ;;  %v968_v30 = vrot.slane %v750_v60, %v1524_v18 }
 0x27b   :  { %1199 = vadd.xlane.f32.xlu0 %v1198_v12 }
 0x27c   :  { %v1148_v3 = vsel %vm271_vm4, %v968_v30, %v964_v50 }
 0x27d   :  { %v753_v14 = vpop.permute.xlu1 %752  ;;  %v756_v4 = vpop.permute.xlu0 %755 }
 0x27e   :  { %v972_v54 = vrot.slane %v753_v14, %v1524_v18  ;;  %v976_v49 = vrot.slane %v756_v4, %v1524_v18 }
 0x280   :  { %v1149_v6 = vsel %vm1122_vm6, %v972_v54, %v1148_v3 }
 0x281   :  { %v771_v10 = vpop.permute.xlu1 %770  ;;  %v774_v13 = vpop.permute.xlu0 %773  ;;  %v1150_v58 = vsel %vm1124_vm7, %v976_v49, %v1149_v6 }
 0x282   :  { %v996_v34 = vrot.slane %v771_v10, %v1524_v18  ;;  %v1000_v5 = vrot.slane %v774_v13, %v1524_v18 }
 0x284   :  { %v1155_v57 = vsel %vm271_vm4, %v1000_v5, %v996_v34 }
 0x285   :  { %v795_v15 = vpop.permute.xlu1 %794  ;;  %v798_v22 = vpop.permute.xlu0 %797 }
 0x286   :  { %v1028_v51 = vrot.slane %v795_v15, %v1524_v18  ;;  %v1032_v56 = vrot.slane %v798_v22, %v1524_v18 }
 0x288   :  { %v1162_v1 = vsel %vm271_vm4, %v1032_v56, %v1028_v51 }
 0x289   :  { %v819_v23 = vpop.permute.xlu1 %818  ;;  %v822_v24 = vpop.permute.xlu0 %821 }
 0x28a   :  { %v1060_v0 = vrot.slane %v819_v23, %v1524_v18  ;;  %v1064_v36 = vrot.slane %v822_v24, %v1524_v18 }
 0x28c   :  { %v1169_v8 = vsel %vm271_vm4, %v1064_v36, %v1060_v0 }
 0x28d   :  { %v843_v16 = vpop.permute.xlu1 %842  ;;  %v846_v25 = vpop.permute.xlu0 %845 }
 0x28e   :  { %v1092_v7 = vrot.slane %v843_v16, %v1524_v18  ;;  %v1096_v55 = vrot.slane %v846_v25, %v1524_v18 }
 0x290   :  { %v1176_v44 = vsel %vm271_vm4, %v1096_v55, %v1092_v7 }
 0x291   :  { %v777_v27 = vpop.permute.xlu1 %776  ;;  %v801_v28 = vpop.permute.xlu0 %800 }
 0x292   :  { %v1004_v63 = vrot.slane %v777_v27, %v1524_v18  ;;  %v1036_v20 = vrot.slane %v801_v28, %v1524_v18 }
 0x294   :  { %v1156_v9 = vsel %vm1122_vm6, %v1004_v63, %v1155_v57  ;;  %v1163_v11 = vsel %vm1122_vm6, %v1036_v20, %v1162_v1 }
 0x295   :  { %v825_v29 = vpop.permute.xlu1 %824  ;;  %v849_v31 = vpop.permute.xlu0 %848 }
 0x296   :  { %v1068_v52 = vrot.slane %v825_v29, %v1524_v18  ;;  %v1100_v2 = vrot.slane %v849_v31, %v1524_v18 }
 0x298   :  { %v1170_v60 = vsel %vm1122_vm6, %v1068_v52, %v1169_v8  ;;  %v1177_v4 = vsel %vm1122_vm6, %v1100_v2, %v1176_v44 }
 0x299   :  { %v780_v19 = vpop.permute.xlu1 %779  ;;  %v804_v21 = vpop.permute.xlu0 %803 }
 0x29a   :  { %v1008_v26 = vrot.slane %v780_v19, %v1524_v18  ;;  %v1040_v17 = vrot.slane %v804_v21, %v1524_v18 }
 0x29c   :  { %v1157_v10 = vsel %vm1124_vm7, %v1008_v26, %v1156_v9  ;;  %v1164_v23 = vsel %vm1124_vm7, %v1040_v17, %v1163_v11 }
 0x29d   :  { %v1744_v38 = vpop.permute.xlu1 %827  ;;  %v1746_v39 = vpop.permute.xlu0 %851 }
 0x29e   :  { %v1072_v24 = vrot.slane %v1744_v38, %v1524_v18  ;;  %v1104_v28 = vrot.slane %v1746_v39, %v1524_v18 }
 0x2a0   :  { %v1178_v56 = vsel %vm1124_vm7, %v1104_v28, %v1177_v4 }
 0x2a1   :  { %v759_v40 = vpop.permute.xlu1 %758  ;;  %v783_v41 = vpop.permute.xlu0 %782 }
 0x2a2   :  { %v980_v33 = vrot.slane %v759_v40, %v1524_v18  ;;  %v1012_v12 = vrot.slane %v783_v41, %v1524_v18 }
 0x2a4   :  { %v1151_v16 = vsel %vm1126_vm8, %v980_v33, %v1150_v58  ;;  %v1158_v21 = vsel %vm1126_vm8, %v1012_v12, %v1157_v10 }
 0x2a5   :  { %v1748_v42 = vpop.permute.xlu1 %806  ;;  %v1750_v45 = vpop.permute.xlu0 %830 }
 0x2a6   :  { %v1044_v13 = vrot.slane %v1748_v42, %v1524_v18  ;;  %v1076_v38 = vrot.slane %v1750_v45, %v1524_v18 }
 0x2a8   :  { %v1165_v42 = vsel %vm1126_vm8, %v1044_v13, %v1164_v23  ;;  %v1327_v13 = vld [vmem:[%s1904_s0] sm:$0xff] }
 0x2a9   :  { %v1752_v46 = vpop.permute.xlu1 %854  ;;  %v762_v47 = vpop.permute.xlu0 %761 }
 0x2aa   :  { %v984_v53 = vrot.slane %v762_v47, %v1524_v18  ;;  %v1108_v39 = vrot.slane %v1752_v46, %v1524_v18 }
 0x2ac   :  { %v1152_v29 = vsel %vm1128_vm9, %v984_v53, %v1151_v16  ;;  %v1179_v7 = vsel %vm1126_vm8, %v1108_v39, %v1178_v56  ;;  %v1331_v56 = vld [vmem:[%s1904_s0 + $0x20] sm:$0xff] }
 0x2ad   :  { %v786_v48 = vpop.permute.xlu1 %785  ;;  %v1754_v32 = vpop.permute.xlu0 %809 }
 0x2ae   :  { %v1016_v15 = vrot.slane %v786_v48, %v1524_v18  ;;  %v1048_v25 = vrot.slane %v1754_v32, %v1524_v18 }
 0x2b0   :  { %v1159_v47 = vsel %vm1128_vm9, %v1016_v15, %v1158_v21  ;;  %v1166_v50 = vsel %vm1128_vm9, %v1048_v25, %v1165_v42 }
 0x2b1   :  { %v1759_v59 = vpop.permute.xlu1 %833  ;;  %v1761_v62 = vpop.permute.xlu0 %857 }
 0x2b2   :  { %v1080_v30 = vrot.slane %v1759_v59, %v1524_v18  ;;  %v1112_v6 = vrot.slane %v1761_v62, %v1524_v18 }
 0x2b4   :  { %v1180_v58 = vsel %vm1128_vm9, %v1112_v6, %v1179_v7 }
 0x2b5   :  { %v765_v61 = vpop.permute.xlu1 %764  ;;  %v789_v35 = vpop.permute.xlu0 %788 }
 0x2b6   :  { %v988_v14 = vrot.slane %v765_v61, %v1524_v18  ;;  %v1020_v31 = vrot.slane %v789_v35, %v1524_v18  ;;  %v1171_v61 = vsel %vm1124_vm7, %v1072_v24, %v1170_v60 }
 0x2b7   :  { %v1172_v0 = vsel %vm1126_vm8, %v1076_v38, %v1171_v61  ;;  %v1330_v61 = vld [vmem:[%s1904_s0 + $0x18] sm:$0xff] }
 0x2b8   :  { %v1153_v41 = vsel %vm1130_vm10, %v988_v14, %v1152_v29  ;;  %v1160_v34 = vsel %vm1130_vm10, %v1020_v31, %v1159_v47  ;;  %v1173_v55 = vsel %vm1128_vm9, %v1080_v30, %v1172_v0 }
 0x2b9   :  { %v813_v37 = vpop.permute.xlu1 %812  ;;  %v837_v43 = vpop.permute.xlu0 %836 }
 0x2ba   :  { %v1052_v40 = vrot.slane %v813_v37, %v1524_v18  ;;  %v1084_v46 = vrot.slane %v837_v43, %v1524_v18 }
 0x2bc   :  { %v1167_v51 = vsel %vm1130_vm10, %v1052_v40, %v1166_v50  ;;  %v1174_v26 = vsel %vm1130_vm10, %v1084_v46, %v1173_v55  ;;  %v1333_v55 = vld [vmem:[%s1904_s0 + $0x30] sm:$0xff] }
 0x2bd   :  { %v861_v22 = vpop.permute.xlu1 %860  ;;  %v768_v27 = vpop.permute.xlu0 %767 }
 0x2be   :  { %v992_v19 = vrot.slane %v768_v27, %v1524_v18  ;;  %v1116_v5 = vrot.slane %v861_v22, %v1524_v18  ;;  %v1328_v22 = vld [vmem:[%s1904_s0 + $0x8] sm:$0xff]  ;;  %v1329_v27 = vld [vmem:[%s1904_s0 + $0x10] sm:$0xff] }
 0x2c0   :  { %v1154_v32 = vsel %vm1132_vm11, %v992_v19, %v1153_v41  ;;  %v1181_v57 = vsel %vm1130_vm10, %v1116_v5, %v1180_v58 }
 0x2c1   :  { %v792_v48 = vpop.permute.xlu1 %791  ;;  %v816_v54 = vpop.permute.xlu0 %815  ;;  %v1201_v3 = vsel %vm1191_vm12, %v1154_v32, 0.0 }
 0x2c2   :  { %v1024_v45 = vrot.slane %v792_v48, %v1524_v18  ;;  %v1056_v49 = vrot.slane %v816_v54, %v1524_v18  ;;  %1202 = vadd.xlane.f32.xlu0 %v1201_v3 }
 0x2c4   :  { %v1161_v59 = vsel %vm1132_vm11, %v1024_v45, %v1160_v34  ;;  %v1168_v36 = vsel %vm1132_vm11, %v1056_v49, %v1167_v51 }
 0x2c5   :  { %v840_v62 = vpop.permute.xlu1 %839  ;;  %v1204_v35 = vsel %vm1191_vm12, %v1161_v59, 0.0  ;;  %v864_v20 = vpop.permute.xlu0 %863  ;;  %v1207_v52 = vsel %vm1191_vm12, %v1168_v36, 0.0 }
 0x2c6   :  { %v1088_v63 = vrot.slane %v840_v62, %v1524_v18  ;;  %1205 = vadd.xlane.f32.xlu1 %v1204_v35  ;;  %v1120_v2 = vrot.slane %v864_v20, %v1524_v18  ;;  %1208 = vadd.xlane.f32.xlu0 %v1207_v52  ;;  %v1332_v62 = vld [vmem:[%s1904_s0 + $0x28] sm:$0xff]  ;;  %v1334_v20 = vld [vmem:[%s1904_s0 + $0x38] sm:$0xff] }
 0x2c8   :  { %v1175_v37 = vsel %vm1132_vm11, %v1088_v63, %v1174_v26  ;;  %v1182_v17 = vsel %vm1132_vm11, %v1120_v2, %v1181_v57 }
 0x2c9   :  { %v1210_v1 = vsel %vm1191_vm12, %v1175_v37, 0.0  ;;  %v1213_v33 = vsel %vm1191_vm12, %v1182_v17, 0.0 }
 0x2ca   :  { %1211 = vadd.xlane.f32.xlu1 %v1210_v1  ;;  %1214 = vadd.xlane.f32.xlu0 %v1213_v33 }
 0x2f7   :  { %v1194_v43 = vpop.xlane.xlu1 %1193 }
 0x2f8   :  { %v1284_v8 = vmul.f32 -1.442695, %v1194_v43  ;;  %v1197_v44 = vpop.xlane.xlu0 %1196 }
 0x2f9   :  { %v1285_v9 = vmul.f32 -1.442695, %v1197_v44 }
 0x2fa   :  { %1295 = vpow2.f32 %v1284_v8 }
 0x2fb   :  { %1297 = vpow2.f32 %v1285_v9 }
 0x304   :  { %v1296_v18 = vpop.eup %1295 }
 0x305   :  { %v1298_v53 = vpop.eup %1297  ;;  %v1240_v11 = vadd.f32 1.0, %v1296_v18 }
 0x306   :  { %v1241_v60 = vadd.f32 1.0, %v1298_v53 }
 0x307   :  { %1299 = vrcp.f32 %v1240_v11 }
 0x308   :  { %1301 = vrcp.f32 %v1241_v60  ;;  %v1200_v12 = vpop.xlane.xlu0 %1199 }
 0x309   :  { %v1286_v14 = vmul.f32 -1.442695, %v1200_v12 }
 0x30b   :  { %1303 = vpow2.f32 %v1286_v14 }
 0x311   :  { %v1300_v4 = vpop.eup %1299 }
 0x312   :  { %v1302_v10 = vpop.eup %1301  ;;  %v1264_v15 = vmul.f32 %v1327_v13, %v1300_v4 }
 0x313   :  { %v1265_v23 = vmul.f32 %v1328_v22, %v1302_v10 }
 0x314   :  { %1272 = vst.msk [vmem:[%s1907_s3] sm:$0xff] %vm22_vm0, %v1264_v15 }
 0x315   :  { %v1304_v24 = vpop.eup %1303  ;;  %1273 = vst.msk [vmem:[%s1907_s3 + $0x8] sm:$0xff] %vm22_vm0, %v1265_v23 }
 0x316   :  { %v1242_v16 = vadd.f32 1.0, %v1304_v24 }
 0x318   :  { %1305 = vrcp.f32 %v1242_v16 }
 0x322   :  { %v1306_v25 = vpop.eup %1305 }
 0x323   :  { %v1266_v28 = vmul.f32 %v1329_v27, %v1306_v25 }
 0x325   :  { %1274 = vst.msk [vmem:[%s1907_s3 + $0x10] sm:$0xff] %vm22_vm0, %v1266_v28 }
 0x34f   :  { %v1203_v29 = vpop.xlane.xlu0 %1202 }
 0x350   :  { %v1287_v31 = vmul.f32 -1.442695, %v1203_v29 }
 0x352   :  { %1307 = vpow2.f32 %v1287_v31 }
 0x353   :  { %v1206_v19 = vpop.xlane.xlu1 %1205  ;;  %v1209_v38 = vpop.xlane.xlu0 %1208 }
 0x354   :  { %v1288_v21 = vmul.f32 -1.442695, %v1206_v19  ;;  %v1289_v40 = vmul.f32 -1.442695, %v1209_v38 }
 0x356   :  { %1309 = vpow2.f32 %v1288_v21 }
 0x357   :  { %1311 = vpow2.f32 %v1289_v40  ;;  %v1212_v41 = vpop.xlane.xlu1 %1211  ;;  %v1215_v39 = vpop.xlane.xlu0 %1214 }
 0x358   :  { %v1290_v42 = vmul.f32 -1.442695, %v1212_v41  ;;  %v1291_v47 = vmul.f32 -1.442695, %v1215_v39 }
 0x35a   :  { %1313 = vpow2.f32 %v1290_v42 }
 0x35b   :  { %1315 = vpow2.f32 %v1291_v47 }
 0x35c   :  { %v1308_v48 = vpop.eup %1307 }
 0x35d   :  { %v1243_v32 = vadd.f32 1.0, %v1308_v48 }
 0x35f   :  { %1317 = vrcp.f32 %v1243_v32 }
 0x360   :  { %v1310_v50 = vpop.eup %1309 }
 0x361   :  { %v1312_v30 = vpop.eup %1311  ;;  %v1244_v45 = vadd.f32 1.0, %v1310_v50 }
 0x362   :  { %v1245_v54 = vadd.f32 1.0, %v1312_v30 }
 0x363   :  { %1319 = vrcp.f32 %v1244_v45 }
 0x364   :  { %v1314_v3 = vpop.eup %1313  ;;  %1321 = vrcp.f32 %v1245_v54 }
 0x365   :  { %v1316_v6 = vpop.eup %1315  ;;  %v1246_v46 = vadd.f32 1.0, %v1314_v3 }
 0x366   :  { %v1247_v49 = vadd.f32 1.0, %v1316_v6 }
 0x367   :  { %1323 = vrcp.f32 %v1246_v46 }
 0x368   :  { %1325 = vrcp.f32 %v1247_v49 }
 0x369   :  { %v1318_v34 = vpop.eup %1317 }
 0x36a   :  { %v1267_v5 = vmul.f32 %v1330_v61, %v1318_v34 }
 0x36c   :  { %1275 = vst.msk [vmem:[%s1907_s3 + $0x18] sm:$0xff] %vm22_vm0, %v1267_v5 }
 0x36d   :  { %v1320_v59 = vpop.eup %1319 }
 0x36e   :  { %v1322_v51 = vpop.eup %1321  ;;  %v1268_v0 = vmul.f32 %v1331_v56, %v1320_v59 }
 0x36f   :  { %v1269_v35 = vmul.f32 %v1332_v62, %v1322_v51 }
 0x370   :  { %1276 = vst.msk [vmem:[%s1907_s3 + $0x20] sm:$0xff] %vm22_vm0, %v1268_v0 }
 0x371   :  { %v1324_v36 = vpop.eup %1323  ;;  %1277 = vst.msk [vmem:[%s1907_s3 + $0x28] sm:$0xff] %vm22_vm0, %v1269_v35 }
 0x372   :  { %v1326_v7 = vpop.eup %1325  ;;  %v1270_v63 = vmul.f32 %v1333_v55, %v1324_v36 }
 0x373   :  { %v1271_v52 = vmul.f32 %v1334_v20, %v1326_v7 }
 0x374   :  { %1278 = vst.msk [vmem:[%s1907_s3 + $0x30] sm:$0xff] %vm22_vm0, %v1270_v63 }
 0x375   :  { %1279 = vst.msk [vmem:[%s1907_s3 + $0x38] sm:$0xff] %vm22_vm0, %v1271_v52 }

</bundles_post_ra>
